<compile_context>
chip_gen: v6e
topology: v6e:2x2x1
jax: 0.10.0
libtpu: 0.0.40
codegen_flags: <defaults>
</compile_context>

<pallas_src>
import functools

import jax
import jax.numpy as jnp
from jax.experimental import pallas as pl
from jax.experimental.pallas import tpu as pltpu


BN_EPS = 1e-5


def mlp_kernel(x_ref, w_in_ref, b_in_ref, w_n_ref, b_n_ref,
               gamma_ref, beta_ref, w_out_ref, b_out_ref, o_ref,
               *, use_bf16_matmul):
    """Whole-model forward: fc_in -> ReLU -> [Linear, ReLU, BatchNorm1d]*L -> fc_out.

    All operands live fully in VMEM (small shapes); layers unrolled at trace time.
    """
    x = x_ref[...]
    if x.dtype != jnp.float32:          # x.float(); skip the no-op cast for f32 inputs
        x = x.astype(jnp.float32)

    if use_bf16_matmul:
        # v6e/v7x fast path: bf16 MXU operands, f32 accumulation.
        def mm(a, b):
            return jnp.dot(a.astype(jnp.bfloat16), b.astype(jnp.bfloat16),
                           preferred_element_type=jnp.float32)

        def mm_nt(a, b):   # a @ b.T without materializing a transpose
            return jax.lax.dot_general(
                a.astype(jnp.bfloat16), b.astype(jnp.bfloat16),
                (((1,), (1,)), ((), ())), preferred_element_type=jnp.float32)
    else:
        def mm(a, b):
            return jnp.dot(a, b, preferred_element_type=jnp.float32)

        def mm_nt(a, b):
            return jax.lax.dot_general(a, b, (((1,), (1,)), ((), ())),
                                       preferred_element_type=jnp.float32)

    # fc_in + ReLU
    h = jnp.maximum(mm(x, w_in_ref[...]) + b_in_ref[...], 0.0)

    inv_b = jnp.float32(1.0 / h.shape[0])
    num_layers = w_n_ref.shape[0]
    for i in range(num_layers):                       # unrolled at trace time
        # Linear(hidden, hidden) + ReLU
        h = jnp.maximum(mm(h, w_n_ref[i]) + b_n_ref[i], 0.0)
        # BatchNorm1d (training mode): fused single-sweep batch stats, f32.
        s1 = jnp.sum(h, axis=0, keepdims=True)        # (1, H)
        s2 = jnp.sum(h * h, axis=0, keepdims=True)    # (1, H)
        mean = s1 * inv_b
        var = jnp.maximum(s2 * inv_b - mean * mean, 0.0)   # biased variance
        scale = jax.lax.rsqrt(var + BN_EPS) * gamma_ref[i]
        shift = beta_ref[i] - mean * scale
        h = h * scale + shift                         # one FMA per element

    # fc_out computed transposed -> (num_classes, B): lane-dense along batch.
    o_ref[...] = mm_nt(w_out_ref[...], h) + b_out_ref[...]


@functools.partial(jax.jit, static_argnames=("num_classes", "use_bf16_matmul"))
def mlp_forward(x, params, num_classes, use_bf16_matmul=False):
    (w_in_t, b_in, w_n_t, b_n, gamma, beta, w_out, b_out) = params
    batch = x.shape[0]

    vmem_spec = pl.BlockSpec(memory_space=pltpu.MemorySpace.VMEM)
    kernel = functools.partial(mlp_kernel, use_bf16_matmul=use_bf16_matmul)
    out_t = pl.pallas_call(
        kernel,
        out_shape=jax.ShapeDtypeStruct((num_classes, batch), jnp.float32),
        in_specs=[vmem_spec] * 9,
        out_specs=vmem_spec,
        compiler_params=pltpu.CompilerParams(
            # Explicit scoped-VMEM cap: safe on v7x (64 MiB physical), raises
            # the v5e 16 MiB default.  Shapes here are far below this anyway.
            vmem_limit_bytes=32 * 1024 * 1024,
        ),
    )(x, w_in_t, b_in, w_n_t, b_n, gamma, beta, w_out, b_out)

    if num_classes == 1:
        return out_t.reshape(-1)       # matches x.reshape(-1) in PyTorch
    return out_t.T                     # back to (B, num_classes)


def init_params(key, input_features, hidden_units, num_classes, num_layers):
    """Deterministic synthetic parameters (shapes match the nn.Module __init__)."""
    ks = jax.random.split(key, 8)
    scale = 0.1
    # fc_in: Linear(input_features, hidden) -> stored transposed (in, hidden)
    w_in_t = scale * jax.random.normal(ks[0], (input_features, hidden_units), jnp.float32)
    b_in = scale * jax.random.normal(ks[1], (1, hidden_units), jnp.float32)
    # hidden stack: num_layers x [Linear(hidden, hidden) + BatchNorm1d(hidden)]
    w_n_t = scale * jax.random.normal(ks[2], (num_layers, hidden_units, hidden_units), jnp.float32)
    b_n = scale * jax.random.normal(ks[3], (num_layers, hidden_units), jnp.float32)
    gamma = 1.0 + 0.05 * jax.random.normal(ks[4], (num_layers, hidden_units), jnp.float32)
    beta = 0.05 * jax.random.normal(ks[5], (num_layers, hidden_units), jnp.float32)
    # fc_out kept in PyTorch (num_classes, hidden) layout: the kernel contracts
    # dim 1 against dim 1 of h (NT matmul) to produce a (num_classes, B) output.
    w_out = scale * jax.random.normal(ks[6], (num_classes, hidden_units), jnp.float32)
    b_out = scale * jax.random.normal(ks[7], (num_classes, 1), jnp.float32)
    return (w_in_t, b_in, w_n_t, b_n, gamma, beta, w_out, b_out)


def mlp_reference(x, params, num_classes):
    """Pure-JAX reference mirroring the PyTorch module (training-mode BN)."""
    (w_in_t, b_in, w_n_t, b_n, gamma, beta, w_out, b_out) = params
    h = jnp.maximum(x.astype(jnp.float32) @ w_in_t + b_in, 0.0)
    for i in range(w_n_t.shape[0]):
        h = jnp.maximum(h @ w_n_t[i] + b_n[i], 0.0)
        m = jnp.mean(h, axis=0, keepdims=True)
        v = jnp.mean((h - m) ** 2, axis=0, keepdims=True)
        h = (h - m) / jnp.sqrt(v + BN_EPS) * gamma[i] + beta[i]
    out = h @ w_out.T + b_out.T
    if num_classes == 1:
        out = out.reshape(-1)
    return out


if __name__ == "__main__":
    # Small shapes consistent with the module's forward.
    batch = 8
    input_features = 16
    hidden_units = 32
    num_classes = 1
    num_layers = 2

    key = jax.random.PRNGKey(0)
    kx, kp = jax.random.split(key)
    x = jax.random.normal(kx, (batch, input_features), jnp.float32)
    params = init_params(kp, input_features, hidden_units, num_classes, num_layers)

    ref = mlp_reference(x, params, num_classes)

    # f32 MXU path (exact PyTorch semantics).
    out = jax.block_until_ready(mlp_forward(x, params, num_classes))
    assert out.shape == (batch,), out.shape
    assert jnp.allclose(out, ref, atol=1e-4, rtol=1e-4), (out, ref)

    # bf16-operand MXU path (v6e/v7x fast path; f32 accumulate, f32 BN math).
    out_bf16 = jax.block_until_ready(
        mlp_forward(x, params, num_classes, use_bf16_matmul=True))
    assert out_bf16.shape == (batch,), out_bf16.shape
    assert jnp.allclose(out_bf16, ref, atol=1e-1, rtol=1e-1), (out_bf16, ref)

    print("KERNEL_OK")
</pallas_src>

<mosaic_0001>
module attributes {stable_mosaic.version = 11 : i64} {
  func.func @mlp_kernel(%arg0: memref<8x16xf32, #tpu.memory_space<vmem>>, %arg1: memref<16x32xf32, #tpu.memory_space<vmem>>, %arg2: memref<1x32xf32, #tpu.memory_space<vmem>>, %arg3: memref<2x32x32xf32, #tpu.memory_space<vmem>>, %arg4: memref<2x32xf32, #tpu.memory_space<vmem>>, %arg5: memref<2x32xf32, #tpu.memory_space<vmem>>, %arg6: memref<2x32xf32, #tpu.memory_space<vmem>>, %arg7: memref<1x32xf32, #tpu.memory_space<vmem>>, %arg8: memref<1x1xf32, #tpu.memory_space<vmem>>, %arg9: memref<1x8xf32, #tpu.memory_space<vmem>>) attributes {dimension_semantics = [], scalar_prefetch = 0 : i64, scratch_operands = 0 : i64, tpu.core_type = #tpu.core_type<tc>} {
    %c0 = arith.constant 0 : index
    %c0_0 = arith.constant 0 : index
    %0 = vector.load %arg0[%c0, %c0_0] : memref<8x16xf32, #tpu.memory_space<vmem>>, vector<8x16xf32>
    %c0_1 = arith.constant 0 : index
    %c0_2 = arith.constant 0 : index
    %1 = vector.load %arg1[%c0_1, %c0_2] : memref<16x32xf32, #tpu.memory_space<vmem>>, vector<16x32xf32>
    %cst = arith.constant dense<0.000000e+00> : vector<8x32xf32>
    %2 = tpu.matmul %0, %1, %cst {dimension_numbers = #tpu.dot_dimension_numbers<[1], [0], [0], [1], [0, 0, 1, 1], [], []>} : vector<8x16xf32>, vector<16x32xf32>, vector<8x32xf32> -> vector<8x32xf32>
    %c0_3 = arith.constant 0 : index
    %c0_4 = arith.constant 0 : index
    %3 = vector.load %arg2[%c0_3, %c0_4] : memref<1x32xf32, #tpu.memory_space<vmem>>, vector<1x32xf32>
    %4 = vector.broadcast %3 : vector<1x32xf32> to vector<8x32xf32>
    %5 = arith.addf %2, %4 : vector<8x32xf32>
    %cst_5 = arith.constant 0.000000e+00 : f32
    %6 = vector.broadcast %cst_5 : f32 to vector<8x32xf32>
    %7 = arith.maximumf %5, %6 : vector<8x32xf32>
    %c0_6 = arith.constant 0 : index
    %c0_7 = arith.constant 0 : index
    %c0_8 = arith.constant 0 : index
    %8 = vector.load %arg3[%c0_6, %c0_7, %c0_8] : memref<2x32x32xf32, #tpu.memory_space<vmem>>, vector<1x32x32xf32>
    %9 = vector.shape_cast %8 : vector<1x32x32xf32> to vector<32x32xf32>
    %cst_9 = arith.constant dense<0.000000e+00> : vector<8x32xf32>
    %10 = tpu.matmul %7, %9, %cst_9 {dimension_numbers = #tpu.dot_dimension_numbers<[1], [0], [0], [1], [0, 0, 1, 1], [], []>} : vector<8x32xf32>, vector<32x32xf32>, vector<8x32xf32> -> vector<8x32xf32>
    %c0_10 = arith.constant 0 : index
    %c0_11 = arith.constant 0 : index
    %11 = vector.load %arg4[%c0_10, %c0_11] : memref<2x32xf32, #tpu.memory_space<vmem>>, vector<1x32xf32>
    %12 = vector.shape_cast %11 : vector<1x32xf32> to vector<32xf32>
    %13 = vector.shape_cast %12 : vector<32xf32> to vector<1x32xf32>
    %14 = vector.broadcast %13 : vector<1x32xf32> to vector<8x32xf32>
    %15 = arith.addf %10, %14 : vector<8x32xf32>
    %cst_12 = arith.constant 0.000000e+00 : f32
    %16 = vector.broadcast %cst_12 : f32 to vector<8x32xf32>
    %17 = arith.maximumf %15, %16 : vector<8x32xf32>
    %cst_13 = arith.constant dense<0.000000e+00> : vector<32xf32>
    %18 = vector.multi_reduction <add>, %17, %cst_13 [0] : vector<8x32xf32> to vector<32xf32>
    %19 = vector.shape_cast %18 : vector<32xf32> to vector<1x32xf32>
    %20 = arith.mulf %17, %17 : vector<8x32xf32>
    %cst_14 = arith.constant dense<0.000000e+00> : vector<32xf32>
    %21 = vector.multi_reduction <add>, %20, %cst_14 [0] : vector<8x32xf32> to vector<32xf32>
    %22 = vector.shape_cast %21 : vector<32xf32> to vector<1x32xf32>
    %cst_15 = arith.constant 1.250000e-01 : f32
    %23 = vector.broadcast %cst_15 : f32 to vector<1x32xf32>
    %24 = arith.mulf %19, %23 : vector<1x32xf32>
    %cst_16 = arith.constant 1.250000e-01 : f32
    %25 = vector.broadcast %cst_16 : f32 to vector<1x32xf32>
    %26 = arith.mulf %22, %25 : vector<1x32xf32>
    %27 = arith.mulf %24, %24 : vector<1x32xf32>
    %28 = arith.subf %26, %27 : vector<1x32xf32>
    %cst_17 = arith.constant 0.000000e+00 : f32
    %29 = vector.broadcast %cst_17 : f32 to vector<1x32xf32>
    %30 = arith.maximumf %28, %29 : vector<1x32xf32>
    %cst_18 = arith.constant 9.99999974E-6 : f32
    %31 = vector.broadcast %cst_18 : f32 to vector<1x32xf32>
    %32 = arith.addf %30, %31 : vector<1x32xf32>
    %33 = math.rsqrt %32 : vector<1x32xf32>
    %c0_19 = arith.constant 0 : index
    %c0_20 = arith.constant 0 : index
    %34 = vector.load %arg5[%c0_19, %c0_20] : memref<2x32xf32, #tpu.memory_space<vmem>>, vector<1x32xf32>
    %35 = vector.shape_cast %34 : vector<1x32xf32> to vector<32xf32>
    %36 = vector.shape_cast %35 : vector<32xf32> to vector<1x32xf32>
    %37 = arith.mulf %33, %36 : vector<1x32xf32>
    %c0_21 = arith.constant 0 : index
    %c0_22 = arith.constant 0 : index
    %38 = vector.load %arg6[%c0_21, %c0_22] : memref<2x32xf32, #tpu.memory_space<vmem>>, vector<1x32xf32>
    %39 = vector.shape_cast %38 : vector<1x32xf32> to vector<32xf32>
    %40 = arith.mulf %24, %37 : vector<1x32xf32>
    %41 = vector.shape_cast %39 : vector<32xf32> to vector<1x32xf32>
    %42 = arith.subf %41, %40 : vector<1x32xf32>
    %43 = vector.broadcast %37 : vector<1x32xf32> to vector<8x32xf32>
    %44 = arith.mulf %17, %43 : vector<8x32xf32>
    %45 = vector.broadcast %42 : vector<1x32xf32> to vector<8x32xf32>
    %46 = arith.addf %44, %45 : vector<8x32xf32>
    %c1 = arith.constant 1 : index
    %c0_23 = arith.constant 0 : index
    %c0_24 = arith.constant 0 : index
    %47 = vector.load %arg3[%c1, %c0_23, %c0_24] : memref<2x32x32xf32, #tpu.memory_space<vmem>>, vector<1x32x32xf32>
    %48 = vector.shape_cast %47 : vector<1x32x32xf32> to vector<32x32xf32>
    %cst_25 = arith.constant dense<0.000000e+00> : vector<8x32xf32>
    %49 = tpu.matmul %46, %48, %cst_25 {dimension_numbers = #tpu.dot_dimension_numbers<[1], [0], [0], [1], [0, 0, 1, 1], [], []>} : vector<8x32xf32>, vector<32x32xf32>, vector<8x32xf32> -> vector<8x32xf32>
    %c1_26 = arith.constant 1 : index
    %c0_27 = arith.constant 0 : index
    %50 = vector.load %arg4[%c1_26, %c0_27] : memref<2x32xf32, #tpu.memory_space<vmem>>, vector<1x32xf32>
    %51 = vector.shape_cast %50 : vector<1x32xf32> to vector<32xf32>
    %52 = vector.shape_cast %51 : vector<32xf32> to vector<1x32xf32>
    %53 = vector.broadcast %52 : vector<1x32xf32> to vector<8x32xf32>
    %54 = arith.addf %49, %53 : vector<8x32xf32>
    %cst_28 = arith.constant 0.000000e+00 : f32
    %55 = vector.broadcast %cst_28 : f32 to vector<8x32xf32>
    %56 = arith.maximumf %54, %55 : vector<8x32xf32>
    %cst_29 = arith.constant dense<0.000000e+00> : vector<32xf32>
    %57 = vector.multi_reduction <add>, %56, %cst_29 [0] : vector<8x32xf32> to vector<32xf32>
    %58 = vector.shape_cast %57 : vector<32xf32> to vector<1x32xf32>
    %59 = arith.mulf %56, %56 : vector<8x32xf32>
    %cst_30 = arith.constant dense<0.000000e+00> : vector<32xf32>
    %60 = vector.multi_reduction <add>, %59, %cst_30 [0] : vector<8x32xf32> to vector<32xf32>
    %61 = vector.shape_cast %60 : vector<32xf32> to vector<1x32xf32>
    %cst_31 = arith.constant 1.250000e-01 : f32
    %62 = vector.broadcast %cst_31 : f32 to vector<1x32xf32>
    %63 = arith.mulf %58, %62 : vector<1x32xf32>
    %cst_32 = arith.constant 1.250000e-01 : f32
    %64 = vector.broadcast %cst_32 : f32 to vector<1x32xf32>
    %65 = arith.mulf %61, %64 : vector<1x32xf32>
    %66 = arith.mulf %63, %63 : vector<1x32xf32>
    %67 = arith.subf %65, %66 : vector<1x32xf32>
    %cst_33 = arith.constant 0.000000e+00 : f32
    %68 = vector.broadcast %cst_33 : f32 to vector<1x32xf32>
    %69 = arith.maximumf %67, %68 : vector<1x32xf32>
    %cst_34 = arith.constant 9.99999974E-6 : f32
    %70 = vector.broadcast %cst_34 : f32 to vector<1x32xf32>
    %71 = arith.addf %69, %70 : vector<1x32xf32>
    %72 = math.rsqrt %71 : vector<1x32xf32>
    %c1_35 = arith.constant 1 : index
    %c0_36 = arith.constant 0 : index
    %73 = vector.load %arg5[%c1_35, %c0_36] : memref<2x32xf32, #tpu.memory_space<vmem>>, vector<1x32xf32>
    %74 = vector.shape_cast %73 : vector<1x32xf32> to vector<32xf32>
    %75 = vector.shape_cast %74 : vector<32xf32> to vector<1x32xf32>
    %76 = arith.mulf %72, %75 : vector<1x32xf32>
    %c1_37 = arith.constant 1 : index
    %c0_38 = arith.constant 0 : index
    %77 = vector.load %arg6[%c1_37, %c0_38] : memref<2x32xf32, #tpu.memory_space<vmem>>, vector<1x32xf32>
    %78 = vector.shape_cast %77 : vector<1x32xf32> to vector<32xf32>
    %79 = arith.mulf %63, %76 : vector<1x32xf32>
    %80 = vector.shape_cast %78 : vector<32xf32> to vector<1x32xf32>
    %81 = arith.subf %80, %79 : vector<1x32xf32>
    %82 = vector.broadcast %76 : vector<1x32xf32> to vector<8x32xf32>
    %83 = arith.mulf %56, %82 : vector<8x32xf32>
    %84 = vector.broadcast %81 : vector<1x32xf32> to vector<8x32xf32>
    %85 = arith.addf %83, %84 : vector<8x32xf32>
    %c0_39 = arith.constant 0 : index
    %c0_40 = arith.constant 0 : index
    %86 = vector.load %arg7[%c0_39, %c0_40] : memref<1x32xf32, #tpu.memory_space<vmem>>, vector<1x32xf32>
    %cst_41 = arith.constant dense<0.000000e+00> : vector<1x8xf32>
    %87 = tpu.matmul %86, %85, %cst_41 {dimension_numbers = #tpu.dot_dimension_numbers<[1], [1], [0], [0], [0, 0, 1, 0], [], []>} : vector<1x32xf32>, vector<8x32xf32>, vector<1x8xf32> -> vector<1x8xf32>
    %c0_42 = arith.constant 0 : index
    %c0_43 = arith.constant 0 : index
    %88 = vector.load %arg8[%c0_42, %c0_43] : memref<1x1xf32, #tpu.memory_space<vmem>>, vector<1x1xf32>
    %89 = vector.broadcast %88 : vector<1x1xf32> to vector<1x8xf32>
    %90 = arith.addf %87, %89 : vector<1x8xf32>
    %c0_44 = arith.constant 0 : index
    %c0_45 = arith.constant 0 : index
    %91 = vector.load %arg9[%c0_44, %c0_45] : memref<1x8xf32, #tpu.memory_space<vmem>>, vector<1x8xf32>
    tpu.vector_store %arg9[%c0_44, %c0_45], %90 {strides = array<i32>} : memref<1x8xf32, #tpu.memory_space<vmem>>, vector<1x8xf32>,
    return
  }
}

</mosaic_0001>

<bundles_post_ra>
// kernel: mlp_forward.1
= control target key start
LH: loop header
LB: loop body
LE: loop exit
PB: predicated region body
PF: predicated region fallthrough
CT: control target
= control target key end

     0   :  { %s773_s0 = inlined_call_operand.hbm [shape: f32[8,16], index: 0, kind: input, shape index: {}]   ;;  %s774_s1 = inlined_call_operand.hbm [shape: f32[16,32], index: 1, kind: input, shape index: {}]   ;;  %s775_s2 = inlined_call_operand.vmem [shape: f32[1,32], index: 2, kind: input, shape index: {}]   ;;  %s776_s3 = inlined_call_operand.hbm [shape: f32[2,32,32], index: 3, kind: input, shape index: {}]   ;;  %s777_s4 = inlined_call_operand.vmem [shape: f32[2,32], index: 4, kind: input, shape index: {}]   ;;  %s778_s5 = inlined_call_operand.vmem [shape: f32[2,32], index: 5, kind: input, shape index: {}]   ;;  %s779_s6 = inlined_call_operand.vmem [shape: f32[2,32], index: 6, kind: input, shape index: {}]   ;;  %s780_s7 = inlined_call_operand.vmem [shape: f32[1,32], index: 7, kind: input, shape index: {}]   ;;  %s781_s8 = inlined_call_operand.<no memory space> [shape: f32[1,1], index: 8, kind: input, shape index: {}]   ;;  %s782_s9 = inlined_call_operand.hbm [shape: f32[1,8], index: 9, kind: output, shape index: {}]  }
   0x1   :  { %v14_v0 = vstv %s781_s8 }
   0x2   :  { %15 = vst [vmem:[#allocation2] sm:$0x1] %v14_v0 }
   0x3   :  { %16 = vsyncpa [#allocation4], 0 }
   0x4   :  { %17 = vsyncpa [#allocation7], 0 }
   0x5   :  { %18 = vsyncpa [#allocation5], 0  ;;  %s663_s11 = smov [#allocation6]  }
   0x6   :  { %s34_s12 = sshll.u32 %s663_s11, 4  ;;  %s35_s12 = int_to_ptr.vmem [resolvable:$true] %s34_s12 }
   0x7   :  { %s585_s13 = scalar_lea.vmem %s35_s12, 256  ;;  %p590_p1 = scmp.lt.s32.totalorder %s35_s12, %s35_s12 }
   0x8   :  { %p586_p0 = scmp.ne.s32.totalorder %s35_s12, %s585_s13  ;;  %p591_p2 = scmp.lt.s32.totalorder %s585_s13, %s585_s13 }
   0xa   :  { %p592_p3 = por %p591_p2, %p590_p1 }
   0xc   :  { %p593_p4 = pnand %p592_p3, %p586_p0 }
   0xe   :  { %596 = shalt.err (!%p593_p4)
}
   0xf   :  { %s664_s14 = smov 128   ;;  %s665_s15 = smov 8  }
  0x10   :  { %40 = dma.hbm_to_vmem [thread:$0]  %s774_s1, 256, %s35_s12, [#allocation7], %s664_s14, %s664_s14, %s665_s15  }
  0x11   :  { %s666_s8 = smov [#allocation3]   ;;  %s667_s19 = smov [#allocation8]  }
  0x12   :  { %s25_s18 = sshll.u32 %s666_s8, 4  ;;  %s48_s20 = sshll.u32 %s667_s19, 4  ;;  %s26_s18 = int_to_ptr.vmem [resolvable:$true] %s25_s18  ;;  %s49_s20 = int_to_ptr.vmem [resolvable:$true] %s48_s20 }
  0x13   :  { %s605_s21 = scalar_lea.vmem %s26_s18, 128  ;;  %p610_p6 = scmp.lt.s32.totalorder %s26_s18, %s26_s18 }
  0x14   :  { %p606_p5 = scmp.ne.s32.totalorder %s26_s18, %s605_s21  ;;  %p611_p7 = scmp.lt.s32.totalorder %s605_s21, %s605_s21 }
  0x16   :  { %p612_p8 = por %p611_p7, %p610_p6 }
  0x18   :  { %p613_p9 = pnand %p612_p8, %p606_p5 }
  0x1a   :  { %616 = shalt.err (!%p613_p9)
}
  0x1b   :  { %28 = dma.hbm_to_vmem [thread:$0]  %s773_s0, 128, %s26_s18, [#allocation4]  }
  0x1c   :  { %s625_s24 = scalar_lea.vmem %s49_s20, 1024  ;;  %p630_p11 = scmp.lt.s32.totalorder %s49_s20, %s49_s20 }
  0x1d   :  { %p626_p10 = scmp.ne.s32.totalorder %s49_s20, %s625_s24  ;;  %p631_p12 = scmp.lt.s32.totalorder %s625_s24, %s625_s24 }
  0x1f   :  { %p632_p13 = por %p631_p12, %p630_p11 }
  0x21   :  { %p633_p0 = pnand %p632_p13, %p626_p10 }
  0x23   :  { %636 = shalt.err (!%p633_p0)
}
  0x24   :  { %54 = dma.hbm_to_vmem [thread:$0]  %s776_s3, 1024, %s49_s20, [#allocation7], %s664_s14, %s664_s14, %s665_s15  }
  0x25   :  { %657 = dma.done.wait [#allocation4], 128  }
  0x26   :  { %658 = vsyncadd [#allocation4], 4294967168 }
  0x27   :  { %659 = dma.done.wait [#allocation7], 1280  }
  0x28   :  { %660 = vsyncadd [#allocation7], 4294966016  ;;  %v668_v1 = vmov 0.0   ;;  %vm669_vm0 = vmmov 0   ;;  %v76_v2 = vld [vmem:[#allocation6 + $0x8] sm:$0xff]  ;;  %v75_v3 = vld [vmem:[#allocation6] sm:$0xff]  ;;  %v270_v44 = vlaneseq }
  0x29   :  { %529 = vmatprep.subr.mxu0 %v668_v1  ;;  %533 = vmatprep.mubr.msk.f32.mxu0 %vm669_vm0, %v668_v1  ;;  %v74_v4 = vld [vmem:[#allocation3] sm:$0xff]  ;;  %vm84_vm1 = vcmask 130048   ;;  %v162_v5 = vld [vmem:[#allocation8 + $0x18] sm:$0xff]  ;;  %v161_v6 = vld [vmem:[#allocation8 + $0x10] sm:$0xff]  ;;  %vm168_vm2 = vcmask 261120   ;;  %v670_v58 = vmov 0  }
  0x2a   :  { %536 = vmatprep.subr.mxu1 %v668_v1  ;;  %544 = vmatprep.mubr.msk.f32.mxu1 %vm669_vm0, %v668_v1  ;;  %v160_v7 = vld [vmem:[#allocation8 + $0x8] sm:$0xff]  ;;  %v159_v8 = vld [vmem:[#allocation8] sm:$0xff]  ;;  %v284_v14 = vld [vmem:[#allocation8 + $0x38] sm:$0xff]  ;;  %v271_v45 = vshrl.u32 %v270_v44, 7  ;;  %vm488_vm3 = vcmask 57344  }
  0x2b   :  { %530 = vmatpush3.msra.mxu0 %v76_v2  ;;  %537 = vmatpush3.msra.mxu1 %v162_v5  ;;  %v506_v9 = vld [vmem:[%s775_s2] ss:$0 sm:$0xff]  ;;  %v283_v15 = vld [vmem:[#allocation8 + $0x30] sm:$0xff]  ;;  %v282_v16 = vld [vmem:[#allocation8 + $0x28] sm:$0xff] }
  0x2c   :  { %531 = vmatprep.subr.mxu0 %v668_v1  ;;  %538 = vmatprep.subr.mxu1 %v668_v1  ;;  %v281_v17 = vld [vmem:[#allocation8 + $0x20] sm:$0xff]  ;;  %v272_v47 = vsub.s32 0, %v271_v45  ;;  %v510_v59 = vld [vmem:[%s777_s4 + $0x1] ss:$0 sm:$0xff] }
  0x2d   :  { %532 = vmatpush3.msra.mxu0 %v75_v3  ;;  %539 = vmatpush3.msra.mxu1 %v161_v6  ;;  %v508_v18 = vld [vmem:[%s777_s4] ss:$0 sm:$0xff] }
  0x2e   :  { %534 = vmatmul.mubr.msk.f32.vlgmr.msra.gmra.mxu0 %vm84_vm1, %v74_v4  ;;  %547 = vmatprep.subr.mxu0 %v668_v1  ;;  %v265_v46 = vld [vmem:[%s778_s5] sm:$0x1] }
  0x2f   :  { %555 = vmatprep.mubr.msk.f32.mxu0 %vm669_vm0, %v668_v1  ;;  %540 = vmatprep.subr.mxu1 %v668_v1  ;;  %v267_v50 = vld [vmem:[%s779_s6] sm:$0x1] }
  0x30   :  { %541 = vmatpush3.msra.mxu1 %v160_v7  ;;  %548 = vmatpush3.msra.mxu0 %v284_v14  ;;  %v402_v57 = vld [vmem:[#allocation2] sm:$0x1] }
  0x31   :  { %542 = vmatprep.subr.mxu1 %v668_v1  ;;  %549 = vmatprep.subr.mxu0 %v668_v1 }
  0x32   :  { %543 = vmatpush3.msra.mxu1 %v159_v8  ;;  %550 = vmatpush3.msra.mxu0 %v283_v15 }
  0x33   :  { %558 = vmatprep.subr.mxu1 %v668_v1  ;;  %551 = vmatprep.subr.mxu0 %v668_v1 }
  0x34   :  { %552 = vmatpush3.msra.mxu0 %v282_v16  ;;  %572 = vset.pattern.permute.xlu0 %v670_v58 }
  0x35   :  { %553 = vmatprep.subr.mxu0 %v668_v1  ;;  %405 = vperm.xlu0 %572, %v402_v57  }
  0x36   :  { %554 = vmatpush3.msra.mxu0 %v281_v17 }
  0xee   :  { %v154_v10 = vpop.f32.mrf.mxu0 }
  0xef   :  { %v155_v11 = vadd.f32 %v506_v9, %v154_v10 }
  0xf0   :  { %v535_v12 = vpop.f32.mrf.mxu0 }
  0xf1   :  { %v158_v13 = vmax.f32 %v155_v11, 0.0 }
  0xf3   :  { %545 = vmatmul.mubr.msk.f32.vlgmr.msra.gmra.mxu1 %vm168_vm2, %v158_v13 }
  0xf4   :  { %560 = vmatprep.mubr.msk.f32.mxu1 %vm669_vm0, %v668_v1 }
 0x1b3   :  { %v238_v19 = vpop.f32.mrf.mxu1 }
 0x1b4   :  { %v239_v20 = vadd.f32 %v508_v18, %v238_v19 }
 0x1b5   :  { %v546_v21 = vpop.f32.mrf.mxu1 }
 0x1b6   :  { %v242_v22 = vmax.f32 %v239_v20, 0.0  ;;  %v386_v21 = vld [vmem:[%s778_s5 + $0x1] sm:$0x1]  ;;  %s671_s5 = smov [#allocation9]  }
 0x1b7   :  { %s496_s17 = sshll.u32 %s671_s5, 4  ;;  %s497_s17 = int_to_ptr.vmem [resolvable:$true] %s496_s17 }
 0x1b8   :  { %v243_v23 = vsel %vm168_vm2, %v242_v22, 0.0  ;;  %v250_v24 = vmul.f32 %v242_v22, %v242_v22  ;;  %s641_s8 = scalar_lea.vmem %s497_s17, 32  ;;  %p642_p2 = scmp.lt.s32.totalorder %s497_s17, %s497_s17 }
 0x1b9   :  { %v244_v25 = vrot.slane %v243_v23, 4 }
 0x1ba   :  { %v251_v26 = vsel %vm168_vm2, %v250_v24, 0.0  ;;  %v388_v24 = vld [vmem:[%s779_s6 + $0x1] sm:$0x1]  ;;  %s637_s6 = scalar_lea.vmem %s497_s17, 16 }
 0x1bb   :  { %v245_v27 = vadd.f32 %v244_v25, %v243_v23  ;;  %v252_v28 = vrot.slane %v251_v26, 4  ;;  %p638_p1 = scmp.ne.s32.totalorder %s497_s17, %s637_s6  ;;  %p643_p3 = scmp.lt.s32.totalorder %s641_s8, %s637_s6 }
 0x1bd   :  { %v246_v29 = vrot.slane %v245_v27, 2  ;;  %v253_v30 = vadd.f32 %v252_v28, %v251_v26  ;;  %p644_p4 = por %p643_p3, %p642_p2 }
 0x1bf   :  { %v247_v31 = vadd.f32 %v246_v29, %v245_v27  ;;  %v254_v32 = vrot.slane %v253_v30, 2  ;;  %p645_p5 = pnand %p644_p4, %p638_p1 }
 0x1c1   :  { %v248_v33 = vrot.slane %v247_v31, 1  ;;  %v255_v34 = vadd.f32 %v254_v32, %v253_v30  ;;  %v406_v32 = vpop.permute.xlu0 %405 }
 0x1c3   :  { %v249_v35 = vadd.f32 %v248_v33, %v247_v31  ;;  %v256_v36 = vrot.slane %v255_v34, 1  ;;  %v401_v31 = vld [vmem:[%s780_s7] sm:$0x1]  ;;  %v411_v33 = vrot.slane %v406_v32, %v272_v47 }
 0x1c5   :  { %v257_v37 = vadd.f32 %v256_v36, %v255_v34  ;;  %v258_v38 = vmul.f32 0.125, %v249_v35 }
 0x1c7   :  { %v259_v39 = vmul.f32 0.125, %v257_v37  ;;  %v260_v40 = vmul.f32 %v258_v38, %v258_v38 }
 0x1c9   :  { %v261_v41 = vsub.f32 %v259_v39, %v260_v40 }
 0x1cb   :  { %v262_v42 = vmax.f32 %v261_v41, 0.0 }
 0x1cd   :  { %v263_v43 = vadd.f32 1e-05, %v262_v42 }
 0x1cf   :  { %573 = vrsqrt.f32 %v263_v43 }
 0x1dc   :  { %v574_v48 = vpop.eup %573 }
 0x1dd   :  { %v266_v49 = vmul.f32 %v574_v48, %v265_v46 }
 0x1df   :  { %v268_v51 = vmul.f32 %v266_v49, %v258_v38  ;;  %v273_v52 = vrot.slane %v266_v49, %v272_v47 }
 0x1e1   :  { %v269_v53 = vsub.f32 %v267_v50, %v268_v51  ;;  %v274_v54 = vmul.f32 %v273_v52, %v242_v22 }
 0x1e3   :  { %v278_v55 = vrot.slane %v269_v53, %v272_v47 }
 0x1e5   :  { %v279_v56 = vadd.f32 %v278_v55, %v274_v54 }
 0x1e7   :  { %556 = vmatmul.mubr.msk.f32.vlgmr.msra.gmra.mxu0 %vm168_vm2, %v279_v56 }
 0x2a7   :  { %v359_v60 = vpop.f32.mrf.mxu0 }
 0x2a8   :  { %v360_v61 = vadd.f32 %v510_v59, %v359_v60 }
 0x2a9   :  { %v557_v62 = vpop.f32.mrf.mxu0 }
 0x2aa   :  { %v363_v63 = vmax.f32 %v360_v61, 0.0 }
 0x2ac   :  { %v364_v0 = vsel %vm168_vm2, %v363_v63, 0.0  ;;  %v371_v1 = vmul.f32 %v363_v63, %v363_v63 }
 0x2ad   :  { %v365_v2 = vrot.slane %v364_v0, 4 }
 0x2ae   :  { %v372_v3 = vsel %vm168_vm2, %v371_v1, 0.0 }
 0x2af   :  { %v366_v4 = vadd.f32 %v365_v2, %v364_v0  ;;  %v373_v5 = vrot.slane %v372_v3, 4 }
 0x2b1   :  { %v367_v6 = vrot.slane %v366_v4, 2  ;;  %v374_v7 = vadd.f32 %v373_v5, %v372_v3 }
 0x2b3   :  { %v368_v8 = vadd.f32 %v367_v6, %v366_v4  ;;  %v375_v9 = vrot.slane %v374_v7, 2 }
 0x2b5   :  { %v369_v10 = vrot.slane %v368_v8, 1  ;;  %v376_v11 = vadd.f32 %v375_v9, %v374_v7 }
 0x2b7   :  { %v370_v12 = vadd.f32 %v369_v10, %v368_v8  ;;  %v377_v13 = vrot.slane %v376_v11, 1 }
 0x2b9   :  { %v378_v14 = vadd.f32 %v377_v13, %v376_v11  ;;  %v379_v15 = vmul.f32 0.125, %v370_v12 }
 0x2bb   :  { %v380_v16 = vmul.f32 0.125, %v378_v14  ;;  %v381_v17 = vmul.f32 %v379_v15, %v379_v15 }
 0x2bd   :  { %v382_v18 = vsub.f32 %v380_v16, %v381_v17 }
 0x2bf   :  { %v383_v19 = vmax.f32 %v382_v18, 0.0 }
 0x2c1   :  { %v384_v20 = vadd.f32 1e-05, %v383_v19 }
 0x2c3   :  { %575 = vrsqrt.f32 %v384_v20 }
 0x2d0   :  { %v576_v22 = vpop.eup %575 }
 0x2d1   :  { %v387_v23 = vmul.f32 %v576_v22, %v386_v21 }
 0x2d3   :  { %v389_v25 = vmul.f32 %v387_v23, %v379_v15  ;;  %v394_v26 = vrot.slane %v387_v23, %v272_v47 }
 0x2d5   :  { %v390_v27 = vsub.f32 %v388_v24, %v389_v25  ;;  %v395_v28 = vmul.f32 %v394_v26, %v363_v63 }
 0x2d7   :  { %v399_v29 = vrot.slane %v390_v27, %v272_v47 }
 0x2d9   :  { %v400_v30 = vadd.f32 %v399_v29, %v395_v28 }
 0x2db   :  { %559 = vmatpush3.xpose.msk.msra.mxu1 %vm168_vm2, %v400_v30 }
 0x2de   :  { %561 = vmatmul.mubr.msk.f32.vlgmr.msra.gmra.mxu1 %vm168_vm2, %v401_v31 }
 0x39e   :  { %v484_v34 = vpop.f32.mrf.mxu1 }
 0x39f   :  { %v485_v35 = vadd.f32 %v484_v34, %v411_v33 }
 0x3a0   :  { %v562_v36 = vpop.f32.mrf.mxu1 }
 0x3a1   :  { %489 = vst.msk [vmem:[#allocation9] sm:$0x1] %vm488_vm3, %v485_v35 }
 0x3a2   :  { %648 = shalt.err (!%p645_p5)
}
 0x3a3   :  { %499 = dma.vmem_to_hbm [thread:$0]  %s497_s17, 16, %s782_s9, [#allocation5]  }
 0x3a4   :  { %661 = dma.done.wait [#allocation5], 16  }
 0x3a5   :  { %662 = vsyncadd [#allocation5], 4294967280 }
 0x3a6   :  { %503 = vsyncpa [#allocation4], 1 }
 0x3a7   :  { %504 = vsyncpa [#allocation7], 1 }
 0x3a8   :  { %505 = vsyncpa [#allocation5], 1 }

</bundles_post_ra>
